<compile_context>
chip_gen: v7x
topology: tpu7x:2x2x1
jax: 0.10.0
libtpu: 0.0.40
codegen_flags: <defaults>
</compile_context>

<pallas_src>
import math
import functools

import jax
import jax.numpy as jnp
from jax.experimental import pallas as pl
from jax.experimental.pallas import tpu as pltpu


def _round_up(x, mult):
    return ((x + mult - 1) // mult) * mult


# ---------------------------------------------------------------------------
# Pallas kernel: per-sample masked + L2-normalized cosine with arcface margin.
# One grid step = one (layer, direction) group  x  one block of `tb` samples.
# ---------------------------------------------------------------------------

def _masked_arcface_sim_kernel(x_ref, m_ref, g_ref, gm_ref, t_ref, out_ref,
                               *, s, cos_m, sin_m, th, mm, easy_margin):
    f32 = jnp.float32

    # (tb, nc, D) masked query choices; masks may arrive bf16 -> promote in VMEM.
    x = x_ref[0].astype(f32) * m_ref[0].astype(f32)
    # (tb, D) masked ground-truth rows (one per sample).
    g = g_ref[0].astype(f32) * gm_ref[0].astype(f32)

    # F.normalize(v, dim=-1) == v * rsqrt(max(sum v^2, 1e-24)); rsqrt -> EUP slot.
    x = x * jax.lax.rsqrt(jnp.maximum(jnp.sum(x * x, axis=-1, keepdims=True), 1e-24))
    g = g * jax.lax.rsqrt(jnp.maximum(jnp.sum(g * g, axis=-1, keepdims=True), 1e-24))

    # Per-sample cosine: each of the nc choices against its own gt row.
    # Elementwise multiply + lane reduce — no bs x bs cross product, no MXU needed.
    cosine = jnp.sum(x * g[:, None, :], axis=-1)                 # (tb, nc)

    # Arcface margin (tiny (tb, nc) tensor, so computing phi everywhere is free).
    sine = jnp.sqrt(jnp.maximum(1.0 - cosine * cosine, 0.0))     # clamp -> NaN-safe
    phi = cosine * cos_m - sine * sin_m
    if easy_margin:
        phi = jnp.where(cosine > 0.0, phi, cosine)
    else:
        phi = jnp.where(cosine > th, phi, cosine - mm)

    tb, nc = cosine.shape
    cols = jax.lax.broadcasted_iota(jnp.int32, (tb, nc), 1)
    is_tgt = cols == t_ref[0]                                    # target == -1 disables margin
    out_ref[0] = (jnp.where(is_tgt, phi, cosine) * s).astype(out_ref.dtype)


def masked_arcface_sim(x, x_mask, gt, gt_mask, target,
                       s=1.0, m=0.0, easy_margin=False,
                       block_budget_bytes=6 << 20):
    """Fused sim_fn over G independent (layer, direction) groups.

      x, x_mask   : (G, bs, nc, D)  query choices + masks
      gt, gt_mask : (G, bs, D)      per-sample ground-truth embedding + mask
      target      : (G, bs) int     margin applied at column target[g, i]; -1 disables it
    Returns (G, bs, nc) float32 logits scaled by `s`.
    """
    Gn, bs, nc, D = x.shape
    assert x_mask.shape == x.shape, (x_mask.shape, x.shape)
    assert gt.shape == (Gn, bs, D) and gt_mask.shape == (Gn, bs, D)
    assert target.shape == (Gn, bs)

    # ---- pick per-block sample count tb under a conservative VMEM budget ----
    # (sizes use the padded VMEM layout: lanes -> 128, sublanes of the (nc, D) tile -> 8)
    d_pad = _round_up(D, 128)
    nc_pad = _round_up(nc, 8)
    per_sample = (nc_pad * d_pad * (x.dtype.itemsize + x_mask.dtype.itemsize)
                  + d_pad * (gt.dtype.itemsize + gt_mask.dtype.itemsize)
                  + 128 * 4 * 2)                      # target + output rows (lane-padded)
    tb = max(8, (block_budget_bytes // max(per_sample, 1)) // 8 * 8)
    bs_pad = _round_up(bs, 8)
    tb = min(tb, bs_pad)
    bs_pad = _round_up(bs_pad, tb)

    pad = bs_pad - bs
    if pad:
        # Zero rows -> zero cosines; target -1 -> margin disabled; sliced off on return.
        x = jnp.pad(x, ((0, 0), (0, pad), (0, 0), (0, 0)))
        x_mask = jnp.pad(x_mask, ((0, 0), (0, pad), (0, 0), (0, 0)))
        gt = jnp.pad(gt, ((0, 0), (0, pad), (0, 0)))
        gt_mask = jnp.pad(gt_mask, ((0, 0), (0, pad), (0, 0)))
        target = jnp.pad(target, ((0, 0), (0, pad)), constant_values=-1)
    t3 = target.reshape(Gn, bs_pad, 1).astype(jnp.int32)

    kernel = functools.partial(
        _masked_arcface_sim_kernel,
        s=float(s),
        cos_m=math.cos(m),
        sin_m=math.sin(m),
        th=math.cos(math.pi - m),
        mm=math.sin(math.pi - m) * m,
        easy_margin=bool(easy_margin),
    )

    # Explicit VMEM cap: double-buffered blocks + margin, kept v7x-aware (<= 64 MiB).
    vmem_limit = int(min(64 << 20, max(32 << 20, (2 * tb * per_sample * 5) // 4 + (2 << 20))))

    # Grid: (groups, batch blocks).  Gn = 2 * n_layers >= 2, so the "parallel" axes always
    # expose at least two steps for the two v7x TensorCores.
    grid = (Gn, bs_pad // tb)
    out = pl.pallas_call(
        kernel,
        out_shape=jax.ShapeDtypeStruct((Gn, bs_pad, nc), jnp.float32),
        grid_spec=pltpu.PrefetchScalarGridSpec(
            num_scalar_prefetch=0,
            grid=grid,
            in_specs=[
                pl.BlockSpec((1, tb, nc, D), lambda g, b: (g, b, 0, 0)),   # x
                pl.BlockSpec((1, tb, nc, D), lambda g, b: (g, b, 0, 0)),   # x_mask
                pl.BlockSpec((1, tb, D), lambda g, b: (g, b, 0)),          # gt
                pl.BlockSpec((1, tb, D), lambda g, b: (g, b, 0)),          # gt_mask
                pl.BlockSpec((1, tb, 1), lambda g, b: (g, b, 0)),          # target
            ],
            out_specs=pl.BlockSpec((1, tb, nc), lambda g, b: (g, b, 0)),
        ),
        compiler_params=pltpu.CompilerParams(
            dimension_semantics=("parallel", "parallel"),
            vmem_limit_bytes=vmem_limit,
        ),
    )(x, x_mask, gt, gt_mask, t3)
    return out[:, :bs]


# ---------------------------------------------------------------------------
# AlignLoss forward on top of the fused kernel.
# ---------------------------------------------------------------------------

def _softmax_cross_entropy(logits, target):
    logits = logits.astype(jnp.float32)
    lse = jax.nn.logsumexp(logits, axis=-1)
    gold = logits[jnp.arange(logits.shape[0]), target]
    return jnp.mean(lse - gold)


def align_loss_forward(att1_list, att1_mask, target1, att2_list, att2_mask, target2,
                       layers=(11,), per_head=False, head_average=False,
                       s=30.0, m=0.5, easy_margin=False, block_budget_bytes=6 << 20):
    """JAX equivalent of AlignLoss.forward (per_head=False paths).

    att*_list : dict layer -> (bs, n_choices, head, n_obj)
    att*_mask : (bs, n_choices, head, n_obj)
    target*   : (bs,) int class index over the n_choices axis (CE format)
    Returns (loss, output_dict).
    """
    # TODO(synk): sim_fn / loss_fn are injected nn.Modules in the original; here
    # sim_fn = masked arcface-margin cosine similarity (Pallas kernel above) and
    # loss_fn = softmax cross-entropy.
    output_dict = {}
    bs = att1_mask.shape[0]
    nc = att1_mask.shape[1]
    if not per_head and not head_average:
        a1m = att1_mask.reshape(bs, nc, -1).astype(jnp.float32)
        a2m = att2_mask.reshape(bs, nc, -1).astype(jnp.float32)
    elif not per_head and head_average:
        a1m = att1_mask[:, :, 0].astype(jnp.float32)
        a2m = att2_mask[:, :, 0].astype(jnp.float32)
    else:
        raise NotImplementedError("per_head=True asserts False in the reference module")

    t1 = target1.astype(jnp.int32)
    t2 = target2.astype(jnp.int32)
    idx = jnp.arange(bs)

    # Stack every (layer, direction) pair into one fused pallas_call.
    xs, ms, gs, gms, ts = [], [], [], [], []
    for layer in layers:
        att1 = att1_list[layer]
        att2 = att2_list[layer]
        if not per_head and not head_average:
            att1 = att1.reshape(bs, nc, -1).astype(jnp.float32)
            att2 = att2.reshape(bs, nc, -1).astype(jnp.float32)
        else:
            att1 = att1.mean(axis=2).astype(jnp.float32)
            att2 = att2.mean(axis=2).astype(jnp.float32)

        att1_gt = att1[idx, t1]                   # (bs, D) ground-truth choice rows
        att2_gt = att2[idx, t2]
        # Direction 1 (q2a):  queries att1[i]  vs gallery att2_gt[i] masked by a2m[:, 0]
        # Direction 2 (qa2r): queries att2[i]  vs gallery att1_gt[i] masked by a1m[:, 0]
        # (the [:, 0] gt-side mask is faithful to the PyTorch call att*_mask[:, [0]])
        xs += [att1, att2]
        ms += [a1m, a2m]
        gs += [att2_gt, att1_gt]
        gms += [a2m[:, 0], a1m[:, 0]]
        ts += [t1, t2]

    sims = masked_arcface_sim(jnp.stack(xs), jnp.stack(ms), jnp.stack(gs),
                              jnp.stack(gms), jnp.stack(ts),
                              s=s, m=m, easy_margin=easy_margin,
                              block_budget_bytes=block_budget_bytes)   # (2L, bs, nc)

    loss = 0.0
    for li, layer in enumerate(layers):
        sim1 = sims[2 * li]
        sim2 = sims[2 * li + 1]
        loss1 = _softmax_cross_entropy(sim1, t1)
        loss2 = _softmax_cross_entropy(sim2, t2)
        loss = loss + (loss1 + loss2) / 2.0

        output_dict[f"loss1_{layer}"] = loss1
        output_dict[f"loss2_{layer}"] = loss2
        output_dict[f"acc1_{layer}"] = jnp.mean((jnp.argmax(sim1, -1) == t1).astype(jnp.float32))
        output_dict[f"acc2_{layer}"] = jnp.mean((jnp.argmax(sim2, -1) == t2).astype(jnp.float32))
        output_dict["q2a_align_logits"] = sim1
        output_dict["qa2r_align_logits"] = sim2

    # TODO(synk): the running .item()/self.loss*/self.acc* accumulators plus
    # get_metrics()/reset() of the original are host-side bookkeeping, not kernel work.
    loss = loss / len(layers)
    return loss, output_dict


# ---------------------------------------------------------------------------
# Pure-JAX reference for the similarity kernel (numerics check).
# ---------------------------------------------------------------------------

def _masked_arcface_sim_reference(x, x_mask, gt, gt_mask, target, s, m, easy_margin):
    f32 = jnp.float32
    xv = x.astype(f32) * x_mask.astype(f32)
    gv = gt.astype(f32) * gt_mask.astype(f32)
    xv = xv / jnp.maximum(jnp.linalg.norm(xv, axis=-1, keepdims=True), 1e-12)
    gv = gv / jnp.maximum(jnp.linalg.norm(gv, axis=-1, keepdims=True), 1e-12)
    cosine = jnp.sum(xv * gv[:, :, None, :], axis=-1)          # (G, bs, nc)
    sine = jnp.sqrt(jnp.clip(1.0 - cosine ** 2, 0.0, None))
    phi = cosine * math.cos(m) - sine * math.sin(m)
    if easy_margin:
        phi = jnp.where(cosine > 0, phi, cosine)
    else:
        phi = jnp.where(cosine > math.cos(math.pi - m),
                        phi, cosine - math.sin(math.pi - m) * m)
    nc = x.shape[2]
    is_tgt = jnp.arange(nc, dtype=jnp.int32)[None, None, :] == target[:, :, None]
    return jnp.where(is_tgt, phi, cosine) * s


if __name__ == "__main__":
    key = jax.random.PRNGKey(0)
    ks = jax.random.split(key, 12)
    s, margin, easy_margin = 30.0, 0.5, False

    # --- 1) standalone numerics check of the fused Pallas sim kernel --------
    # bs=10 exercises the pad-to-8 path; a tiny budget forces tb=8 -> grid (2, 2).
    Gn, bs, nc, D = 2, 10, 4, 256
    x = jax.random.normal(ks[0], (Gn, bs, nc, D), dtype=jnp.float32)
    xm = (jax.random.uniform(ks[1], (Gn, bs, nc, D)) > 0.2).astype(jnp.bfloat16)   # bf16 masks
    gt = jax.random.normal(ks[2], (Gn, bs, D), dtype=jnp.float32)
    gtm = (jax.random.uniform(ks[3], (Gn, bs, D)) > 0.2).astype(jnp.bfloat16)
    tgt = jax.random.randint(ks[4], (Gn, bs), 0, nc, dtype=jnp.int32)

    sim = masked_arcface_sim(x, xm, gt, gtm, tgt, s=s, m=margin,
                             easy_margin=easy_margin, block_budget_bytes=64 * 1024)
    sim = jax.block_until_ready(sim)
    ref = _masked_arcface_sim_reference(x, xm, gt, gtm, tgt, s, margin, easy_margin)
    assert sim.shape == (Gn, bs, nc)
    assert bool(jnp.allclose(sim, ref, atol=1e-3, rtol=1e-3)), "kernel vs reference mismatch"

    # --- 2) AlignLoss forward (per_head=False, head_average=False) ----------
    bs2, nc2, n_head, n_obj = 8, 4, 4, 32            # flattened D = n_head * n_obj = 128
    layer = 11
    att1_list = {layer: jax.random.normal(ks[5], (bs2, nc2, n_head, n_obj), dtype=jnp.float32)}
    att2_list = {layer: jax.random.normal(ks[6], (bs2, nc2, n_head, n_obj), dtype=jnp.float32)}
    att1_mask = (jax.random.uniform(ks[7], (bs2, nc2, n_head, n_obj)) > 0.1).astype(jnp.float32)
    att2_mask = (jax.random.uniform(ks[8], (bs2, nc2, n_head, n_obj)) > 0.1).astype(jnp.float32)
    target1 = jax.random.randint(ks[9], (bs2,), 0, nc2, dtype=jnp.int32)
    target2 = jax.random.randint(ks[10], (bs2,), 0, nc2, dtype=jnp.int32)

    loss, out_dict = align_loss_forward(att1_list, att1_mask, target1,
                                        att2_list, att2_mask, target2,
                                        layers=(layer,), s=s, m=margin,
                                        easy_margin=easy_margin)
    loss = jax.block_until_ready(loss)
    assert out_dict["q2a_align_logits"].shape == (bs2, nc2)
    assert out_dict["qa2r_align_logits"].shape == (bs2, nc2)
    assert bool(jnp.isfinite(loss))

    # Cross-check the q2a logits against the pure-JAX reference.
    a1 = att1_list[layer].reshape(bs2, nc2, -1)
    a2 = att2_list[layer].reshape(bs2, nc2, -1)
    a1m = att1_mask.reshape(bs2, nc2, -1)
    a2m = att2_mask.reshape(bs2, nc2, -1)
    gt2 = a2[jnp.arange(bs2), target2]
    ref1 = _masked_arcface_sim_reference(a1[None], a1m[None], gt2[None],
                                         a2m[:, 0][None], target1[None],
                                         s, margin, easy_margin)[0]
    assert bool(jnp.allclose(out_dict["q2a_align_logits"], ref1, atol=1e-3, rtol=1e-3))

    print("KERNEL_OK")
</pallas_src>

<mosaic_0001>
module attributes {stable_mosaic.version = 11 : i64} {
  func.func @_masked_arcface_sim_kernel(%arg0: i32, %arg1: i32, %arg2: memref<1x8x4x256xf32, #tpu.memory_space<vmem>>, %arg3: memref<1x8x4x256xbf16, #tpu.memory_space<vmem>>, %arg4: memref<1x8x256xf32, #tpu.memory_space<vmem>>, %arg5: memref<1x8x256xbf16, #tpu.memory_space<vmem>>, %arg6: memref<1x8x1xi32, #tpu.memory_space<vmem>>, %arg7: memref<1x8x4xf32, #tpu.memory_space<vmem>>) attributes {dimension_semantics = [#tpu.dimension_semantics<parallel>, #tpu.dimension_semantics<parallel>], iteration_bounds = array<i64: 2, 2>, scalar_prefetch = 0 : i64, scratch_operands = 0 : i64, tpu.core_type = #tpu.core_type<tc>, window_params = [{transform_indices = @transform_0, window_bounds = array<i64: 1, 8, 4, 256>}, {transform_indices = @transform_1, window_bounds = array<i64: 1, 8, 4, 256>}, {transform_indices = @transform_2, window_bounds = array<i64: 1, 8, 256>}, {transform_indices = @transform_3, window_bounds = array<i64: 1, 8, 256>}, {transform_indices = @transform_4, window_bounds = array<i64: 1, 8, 1>}, {transform_indices = @transform_5, window_bounds = array<i64: 1, 8, 4>}]} {
    %c0 = arith.constant 0 : index
    %c0_0 = arith.constant 0 : index
    %c0_1 = arith.constant 0 : index
    %c0_2 = arith.constant 0 : index
    %0 = vector.load %arg2[%c0, %c0_0, %c0_1, %c0_2] : memref<1x8x4x256xf32, #tpu.memory_space<vmem>>, vector<1x8x4x256xf32>
    %1 = vector.shape_cast %0 : vector<1x8x4x256xf32> to vector<8x4x256xf32>
    %c0_3 = arith.constant 0 : index
    %c0_4 = arith.constant 0 : index
    %c0_5 = arith.constant 0 : index
    %c0_6 = arith.constant 0 : index
    %2 = vector.load %arg3[%c0_3, %c0_4, %c0_5, %c0_6] : memref<1x8x4x256xbf16, #tpu.memory_space<vmem>>, vector<1x8x4x256xbf16>
    %3 = vector.shape_cast %2 : vector<1x8x4x256xbf16> to vector<8x4x256xbf16>
    %4 = arith.extf %3 : vector<8x4x256xbf16> to vector<8x4x256xf32>
    %5 = arith.mulf %1, %4 : vector<8x4x256xf32>
    %c0_7 = arith.constant 0 : index
    %c0_8 = arith.constant 0 : index
    %c0_9 = arith.constant 0 : index
    %6 = vector.load %arg4[%c0_7, %c0_8, %c0_9] : memref<1x8x256xf32, #tpu.memory_space<vmem>>, vector<1x8x256xf32>
    %7 = vector.shape_cast %6 : vector<1x8x256xf32> to vector<8x256xf32>
    %c0_10 = arith.constant 0 : index
    %c0_11 = arith.constant 0 : index
    %c0_12 = arith.constant 0 : index
    %8 = vector.load %arg5[%c0_10, %c0_11, %c0_12] : memref<1x8x256xbf16, #tpu.memory_space<vmem>>, vector<1x8x256xbf16>
    %9 = vector.shape_cast %8 : vector<1x8x256xbf16> to vector<8x256xbf16>
    %10 = arith.extf %9 : vector<8x256xbf16> to vector<8x256xf32>
    %11 = arith.mulf %7, %10 : vector<8x256xf32>
    %12 = arith.mulf %5, %5 : vector<8x4x256xf32>
    %cst = arith.constant dense<0.000000e+00> : vector<8x4xf32>
    %13 = vector.multi_reduction <add>, %12, %cst [2] : vector<8x4x256xf32> to vector<8x4xf32>
    %14 = vector.shape_cast %13 : vector<8x4xf32> to vector<8x4x1xf32>
    %cst_13 = arith.constant 1.000000e-24 : f32
    %15 = vector.broadcast %cst_13 : f32 to vector<8x4x1xf32>
    %16 = arith.maximumf %14, %15 : vector<8x4x1xf32>
    %17 = math.rsqrt %16 : vector<8x4x1xf32>
    %18 = vector.broadcast %17 : vector<8x4x1xf32> to vector<8x4x256xf32>
    %19 = arith.mulf %5, %18 : vector<8x4x256xf32>
    %20 = arith.mulf %11, %11 : vector<8x256xf32>
    %cst_14 = arith.constant dense<0.000000e+00> : vector<8xf32>
    %21 = vector.multi_reduction <add>, %20, %cst_14 [1] : vector<8x256xf32> to vector<8xf32>
    %22 = vector.shape_cast %21 : vector<8xf32> to vector<8x1xf32>
    %cst_15 = arith.constant 1.000000e-24 : f32
    %23 = vector.broadcast %cst_15 : f32 to vector<8x1xf32>
    %24 = arith.maximumf %22, %23 : vector<8x1xf32>
    %25 = math.rsqrt %24 : vector<8x1xf32>
    %26 = vector.broadcast %25 : vector<8x1xf32> to vector<8x256xf32>
    %27 = arith.mulf %11, %26 : vector<8x256xf32>
    %28 = vector.shape_cast %27 : vector<8x256xf32> to vector<8x1x256xf32>
    %29 = vector.broadcast %28 : vector<8x1x256xf32> to vector<8x4x256xf32>
    %30 = arith.mulf %19, %29 : vector<8x4x256xf32>
    %cst_16 = arith.constant dense<0.000000e+00> : vector<8x4xf32>
    %31 = vector.multi_reduction <add>, %30, %cst_16 [2] : vector<8x4x256xf32> to vector<8x4xf32>
    %32 = arith.mulf %31, %31 : vector<8x4xf32>
    %cst_17 = arith.constant 1.000000e+00 : f32
    %33 = vector.broadcast %cst_17 : f32 to vector<8x4xf32>
    %34 = arith.subf %33, %32 : vector<8x4xf32>
    %cst_18 = arith.constant 0.000000e+00 : f32
    %35 = vector.broadcast %cst_18 : f32 to vector<8x4xf32>
    %36 = arith.maximumf %34, %35 : vector<8x4xf32>
    %37 = math.sqrt %36 : vector<8x4xf32>
    %cst_19 = arith.constant 0.87758255 : f32
    %38 = vector.broadcast %cst_19 : f32 to vector<8x4xf32>
    %39 = arith.mulf %31, %38 : vector<8x4xf32>
    %cst_20 = arith.constant 0.47942555 : f32
    %40 = vector.broadcast %cst_20 : f32 to vector<8x4xf32>
    %41 = arith.mulf %37, %40 : vector<8x4xf32>
    %42 = arith.subf %39, %41 : vector<8x4xf32>
    %cst_21 = arith.constant -0.87758255 : f32
    %43 = vector.broadcast %cst_21 : f32 to vector<8x4xf32>
    %44 = arith.cmpf ogt, %31, %43 : vector<8x4xf32>
    %cst_22 = arith.constant 0.239712775 : f32
    %45 = vector.broadcast %cst_22 : f32 to vector<8x4xf32>
    %46 = arith.subf %31, %45 : vector<8x4xf32>
    %47 = arith.select %44, %42, %46 : vector<8x4xi1>, vector<8x4xf32>
    %48 = tpu.iota {dimensions = array<i32: 1>} : vector<8x4xi32>
    %c0_23 = arith.constant 0 : index
    %c0_24 = arith.constant 0 : index
    %c0_25 = arith.constant 0 : index
    %49 = vector.load %arg6[%c0_23, %c0_24, %c0_25] : memref<1x8x1xi32, #tpu.memory_space<vmem>>, vector<1x8x1xi32>
    %50 = vector.shape_cast %49 : vector<1x8x1xi32> to vector<8x1xi32>
    %51 = vector.broadcast %50 : vector<8x1xi32> to vector<8x4xi32>
    %52 = arith.cmpi eq, %48, %51 : vector<8x4xi32>
    %53 = arith.select %52, %47, %31 : vector<8x4xi1>, vector<8x4xf32>
    %cst_26 = arith.constant 3.000000e+01 : f32
    %54 = vector.broadcast %cst_26 : f32 to vector<8x4xf32>
    %55 = arith.mulf %53, %54 : vector<8x4xf32>
    %c0_27 = arith.constant 0 : index
    %c0_28 = arith.constant 0 : index
    %c0_29 = arith.constant 0 : index
    %56 = vector.load %arg7[%c0_27, %c0_28, %c0_29] : memref<1x8x4xf32, #tpu.memory_space<vmem>>, vector<1x8x4xf32>
    %57 = vector.shape_cast %56 : vector<1x8x4xf32> to vector<8x4xf32>
    %58 = vector.shape_cast %55 : vector<8x4xf32> to vector<1x8x4xf32>
    tpu.vector_store %arg7[%c0_27, %c0_28, %c0_29], %58 {strides = array<i32>} : memref<1x8x4xf32, #tpu.memory_space<vmem>>, vector<1x8x4xf32>,
    return
  }
  func.func @transform_0(%arg0: i32, %arg1: i32) -> (i32, i32, i32, i32) {
    %c0_i32 = arith.constant 0 : i32
    %c0_i32_0 = arith.constant 0 : i32
    %c0_i32_1 = arith.constant 0 : i32
    return %arg0, %arg1, %c0_i32, %c0_i32_0 : i32, i32, i32, i32
  }
  func.func @transform_1(%arg0: i32, %arg1: i32) -> (i32, i32, i32, i32) {
    %c0_i32 = arith.constant 0 : i32
    %c0_i32_0 = arith.constant 0 : i32
    %c0_i32_1 = arith.constant 0 : i32
    return %arg0, %arg1, %c0_i32, %c0_i32_0 : i32, i32, i32, i32
  }
  func.func @transform_2(%arg0: i32, %arg1: i32) -> (i32, i32, i32) {
    %c0_i32 = arith.constant 0 : i32
    %c0_i32_0 = arith.constant 0 : i32
    return %arg0, %arg1, %c0_i32 : i32, i32, i32
  }
  func.func @transform_3(%arg0: i32, %arg1: i32) -> (i32, i32, i32) {
    %c0_i32 = arith.constant 0 : i32
    %c0_i32_0 = arith.constant 0 : i32
    return %arg0, %arg1, %c0_i32 : i32, i32, i32
  }
  func.func @transform_4(%arg0: i32, %arg1: i32) -> (i32, i32, i32) {
    %c0_i32 = arith.constant 0 : i32
    %c0_i32_0 = arith.constant 0 : i32
    return %arg0, %arg1, %c0_i32 : i32, i32, i32
  }
  func.func @transform_5(%arg0: i32, %arg1: i32) -> (i32, i32, i32) {
    %c0_i32 = arith.constant 0 : i32
    %c0_i32_0 = arith.constant 0 : i32
    return %arg0, %arg1, %c0_i32 : i32, i32, i32
  }
}

</mosaic_0001>

<bundles_post_ra>
// kernel: tpu_custom_call.1
= control target key start
LH: loop header
LB: loop body
LE: loop exit
PB: predicated region body
PF: predicated region fallthrough
CT: control target
= control target key end

     0   :  { %s2287_s0 = inlined_call_operand.hbm [shape: f32[2,16,4,256], index: 0, kind: input, shape index: {}]   ;;  %s2288_s1 = inlined_call_operand.hbm [shape: bf16[2,16,4,256], index: 1, kind: input, shape index: {}]   ;;  %s2289_s2 = inlined_call_operand.hbm [shape: f32[2,16,256], index: 2, kind: input, shape index: {}]   ;;  %s2290_s3 = inlined_call_operand.vmem [shape: bf16[2,16,256], index: 3, kind: input, shape index: {}]   ;;  %s2291_s4 = inlined_call_operand.vmem [shape: s32[2,16,1], index: 4, kind: input, shape index: {}]   ;;  %s2292_s5 = inlined_call_operand.vmem [shape: f32[2,16,4], index: 5, kind: output, shape index: {}]  }
   0x1   :  { %2299 = sst [smem:[#allocation13_spill]] %s2287_s0 }
   0x2   :  { %2300 = sst [smem:[#allocation14_spill]] %s2288_s1 }
   0x3   :  { %2301 = sst [smem:[#allocation15_spill]] %s2290_s3 }
   0x4   :  { %2302 = sst [smem:[#allocation16_spill]] %s2291_s4 }
   0x5   :  { %2303 = sst [smem:[#allocation17_spill]] %s2292_s5 }
   0x6   :  { %10 = vsyncpa [#allocation3], 0 }
   0x7   :  { %12 = vsyncpa [#allocation3 + $0x1], 0 }
   0x8   :  { %13 = vsyncpa [#allocation5], 0 }
   0x9   :  { %15 = vsyncpa [#allocation5 + $0x1], 0  ;;  %s1653_s18 = smov 0   ;;  %s1655_s19 = smov 0  }
   0xa   :  { %s1657_s20 = smov 0   ;;  %s1659_s21 = smov 0  }
   0xb   :  { %s1661_s22 = smov 0   ;;  %s1663_s23 = smov 0  }
   0xc   :  { %s1665_s24 = smov 0   ;;  %s1667_s25 = smov 0  }
   0xd LB: > { %2304 = sst [smem:[#allocation9_spill]] %s1591_s20  ;;  %s2293_s26 = sadd.s32 4294967295, %s1611_s25   ;;  %s1611_s25 = sphi %s1667_s25, %s21_s25   ;;  %s1607_s24 = sphi %s1665_s24, %s2330_s24   ;;  %s1603_s23 = sphi %s1663_s23, %s2329_s23   ;;  %s1599_s22 = sphi %s1661_s22, %s2328_s22   ;;  %s1595_s21 = sphi %s1659_s21, %s2327_s21   ;;  %s1591_s20 = sphi %s1657_s20, %s2322_s20   ;;  %s1587_s19 = sphi %s1655_s19, %s2326_s19   ;;  %s1583_s18 = sphi %s1653_s18, %s2325_s18  }
   0xe   : > { %s30_s27 = sadd.s32 1, %s1603_s23  ;;  %s33_s28 = sadd.s32 1, %s1607_s24 }
   0xf   : > { %p31_p0 = scmp.ge.s32.totalorder %s30_s27, 2  ;;  %s42_s29 = sadd.s32 1, %s1591_s20 }
  0x10   : > { %p49_p1 = scmp.ne.s32.totalorder %s1591_s20, %s1587_s19  ;;  %p50_p2 = scmp.eq.s32.totalorder %s1611_s25, 0 }
  0x11   : > { %s2332_s27 = smov (%p31_p0, %s30_s27), 0  ;;  %s2334_s28 = smov (!%p31_p0, %s33_s28), %s1607_s24 }
  0x12   : > { %2305 = sst [smem:[#allocation10_spill]] %s2332_s27  ;;  %s38_s30 = ssub.s32 %s1603_s23, %s2332_s27 }
  0x13   : > { %p35_p3 = scmp.ge.s32.totalorder %s2334_s28, 2  ;;  %p55_p4 = scmp.ne.s32.totalorder %s1587_s19, %s1583_s18 }
  0x14   : > { %p51_p5 = por %p50_p2, %p49_p1  ;;  %p56_p6 = scmp.eq.s32.totalorder %s2293_s26, 0 }
  0x15   : > { %s2336_s28 = smov (%p35_p3, %s2334_s28), 0  ;;  %p1343_p8 = scmp.lt.s32.totalorder %s1611_s25, 4 }
  0x16   : > { %2306 = sst [smem:[#allocation11_spill]] %s2336_s28  ;;  %p1708_p7 = por %p56_p6, %p55_p4 }
  0x17   : > { %s37_s7 = ssub.s32 %s1607_s24, %s2336_s28  ;;  %s1716_s9 = sand.u32 1, %s1591_s20  }
  0x18   : > { %s2307_s6 = scalar_select %p1708_p7, 1, 0 }
  0x19   : > { %s39_s8 = sor.u32 %s38_s30, %s37_s7  ;;  %s1306_s10 = sshll.u32 %s1603_s23, 4 }
  0x1a   : > { %p40_p9 = scmp.eq.s32.totalorder %s39_s8, 0  ;;  %s1274_s11 = sshll.u32 %s1607_s24, 5 }
  0x1b   : > { %p1720_p10 = pnand %p1343_p8, %p51_p5  ;;  %s1727_s14 = sadd.s32 %s1306_s10, %s1274_s11 }
  0x1c   : > { %s1725_s13 = scalar_select %p40_p9, %s1591_s20, %s42_s29  }
  0x1d   : > { %s2308_s12 = scalar_select %p1720_p10, 1, 0 }
  0x1e   : > { %2309 = sst [smem:[#allocation12_spill]] %s1725_s13  ;;  %s243_s15 = sand.u32 1, %s1611_s25  }
  0x1f   : > { %s1276_s16 = sshll.u32 %s1716_s9, 5  ;;  %s1280_s17 = sshll.u32 %s1727_s14, 5 }
  0x20   : > { %s247_s18 = scalar_lea.vmem [#allocation4], %s1276_s16  ;;  %s2310_s1 = sld [smem:[#allocation14_spill]] }
  0x21   : > { %s257_s30 = sshll.u32 %s247_s18, 4  ;;  %s1739_s29 = scalar_lea.sflag [#allocation5], %s243_s15  ;;  %s1737_s30 = int_to_ptr.vmem [resolvable:$true] %s257_s30 }
  0x22   : > { %p1745_p12 = pneg %p1720_p10 }
  0x26   : > { %s1735_s8 = scalar_lea.hbm %s2310_s1, %s1280_s17  ;;  %s1456_s17 = scalar_lea.hbm %s2310_s1, 2048 }
  0x27   : > { %s1451_s10 = scalar_lea.hbm %s1735_s8, 512  ;;  %p1457_p1 = scmp.lt.u32.totalorder %s1735_s8, %s2310_s1 }
  0x28   : > { %p1452_p11 = scmp.ne.s32.totalorder %s1735_s8, %s1451_s10  ;;  %p1458_p2 = scmp.lt.u32.totalorder %s1456_s17, %s1451_s10 }
  0x29   : > { %p1460_p4 = scmp.lt.u32.totalorder %s1451_s10, %s1735_s8 }
  0x2a   : > { %p1454_p13 = pnand %p1745_p12, %p1452_p11  ;;  %p1459_p3 = por %p1458_p2, %p1457_p1 }
  0x2c   : > { %p1455_p0 = pneg %p1454_p13  ;;  %p1461_p5 = por %p1460_p4, %p1459_p3 }
  0x2e   : > { %p1462_p6 = pnand %p1461_p5, %p1455_p0 }
  0x30   : > { %1465 = shalt.err (!%p1462_p6)
}
  0x31   : > { %s1466_s15 = scalar_lea.vmem %s1737_s30, 512  ;;  %s1613_s26 = smov [#allocation4]  }
  0x32   : > { %p1467_p8 = scmp.ne.s32.totalorder %s1737_s30, %s1466_s15  ;;  %s1471_s16 = sshll.u32 %s1613_s26, 4  ;;  %s1472_s16 = int_to_ptr.vmem [resolvable:$false] %s1471_s16 }
  0x33   : > { %s1473_s18 = scalar_lea.vmem %s1472_s16, 1024  ;;  %p1474_p13 = scmp.lt.s32.totalorder %s1737_s30, %s1472_s16 }
  0x34   : > { %p1469_p9 = pnand %p1467_p8, %p1745_p12  ;;  %p1475_p7 = scmp.lt.s32.totalorder %s1473_s18, %s1466_s15 }
  0x36   : > { %p1470_p11 = pneg %p1469_p9  ;;  %p1476_p1 = por %p1475_p7, %p1474_p13 }
  0x38   : > { %p1477_p2 = pnand %p1476_p1, %p1470_p11 }
  0x3a   : > { %1480 = shalt.err (!%p1477_p2)
}
  0x3b   : > { %s1614_s10 = smov 64   ;;  %s1615_s17 = smov 4  }
  0x3c   : > { %1339 = dma.hbm_to_vmem [thread:$0]  (!%p1720_p10), %s1735_s8, 512, %s1737_s30, %s1739_s29, %s1614_s10, %s1614_s10, %s1615_s17  }
  0x3d   : > { %p1285_p0 = scmp.ge.s32.totalorder %s1611_s25, 1  ;;  %p309_p3 = scmp.lt.s32.totalorder %s1611_s25, 5 }
  0x3e   : > { %s1271_s15 = sshll.u32 %s1716_s9, 6  ;;  %s1275_s26 = sshll.u32 %s1727_s14, 6 }
  0x3f   : > { %p1771_p4 = pnand %p1285_p0, %p309_p3  ;;  %s2313_s0 = sld [smem:[#allocation13_spill]] }
  0x40   : > { %s223_s28 = scalar_lea.vmem [#allocation2], %s1271_s15  ;;  %s220_s30 = scalar_lea.sflag [#allocation3], %s1716_s9 }
  0x41   : > { %s2312_s7 = scalar_select %p1771_p4, 1, 0 }
  0x42   : > { %s233_s27 = sshll.u32 %s223_s28, 4  ;;  %s1782_s27 = int_to_ptr.vmem [resolvable:$true] %s233_s27 }
  0x45   : > { %s1780_s1 = scalar_lea.hbm %s2313_s0, %s1275_s26  ;;  %s1486_s17 = scalar_lea.hbm %s2313_s0, 4096 }
  0x46   : > { %s1481_s8 = scalar_lea.hbm %s1780_s1, 1024  ;;  %p1487_p8 = scmp.lt.u32.totalorder %s1780_s1, %s2313_s0 }
  0x47   : > { %p1482_p7 = scmp.ne.s32.totalorder %s1780_s1, %s1481_s8  ;;  %p1488_p9 = scmp.lt.u32.totalorder %s1486_s17, %s1481_s8 }
  0x48   : > { %p1490_p13 = scmp.lt.u32.totalorder %s1481_s8, %s1780_s1 }
  0x49   : > { %p1484_p5 = pnand %p1482_p7, %p1745_p12  ;;  %p1489_p11 = por %p1488_p9, %p1487_p8 }
  0x4b   : > { %p1485_p6 = pneg %p1484_p5  ;;  %p1491_p1 = por %p1490_p13, %p1489_p11 }
  0x4d   : > { %p1492_p2 = pnand %p1491_p1, %p1485_p6 }
  0x4f   : > { %1495 = shalt.err (!%p1492_p2)
}
  0x50   : > { %s1496_s28 = scalar_lea.vmem %s1782_s27, 1024  ;;  %s1616_s15 = smov [#allocation2]  }
  0x51   : > { %p1497_p0 = scmp.ne.s32.totalorder %s1782_s27, %s1496_s28  ;;  %s1501_s18 = sshll.u32 %s1616_s15, 4  ;;  %s1502_s18 = int_to_ptr.vmem [resolvable:$false] %s1501_s18 }
  0x52   : > { %s1503_s14 = scalar_lea.vmem %s1502_s18, 2048  ;;  %p1504_p5 = scmp.lt.s32.totalorder %s1782_s27, %s1502_s18 }
  0x53   : > { %p1499_p3 = pnand %p1497_p0, %p1745_p12  ;;  %p1505_p4 = scmp.lt.s32.totalorder %s1503_s14, %s1496_s28 }
  0x55   : > { %p1500_p7 = pneg %p1499_p3  ;;  %p1506_p8 = por %p1505_p4, %p1504_p5 }
  0x57   : > { %p1507_p9 = pnand %p1506_p8, %p1500_p7 }
  0x59   : > { %1510 = shalt.err (!%p1507_p9)
}
  0x5a   : > { %s1617_s8 = smov 128   ;;  %s1618_s10 = smov 8  }
  0x5b   : > { %1336 = dma.hbm_to_vmem [thread:$0]  (!%p1720_p10), %s1780_s1, 1024, %s1782_s27, %s220_s30, %s1617_s8, %s1617_s8, %s1618_s10  }
  0x5c   : > { %s1281_s17 = sshll.u32 %s1716_s9, 4  ;;  %s1282_s26 = sshll.u32 %s1603_s23, 1 }
  0x5d   : > { %s1283_s16 = sshll.u32 %s1607_s24, 2  ;;  %s271_s15 = scalar_lea.vmem [#allocation6], %s1281_s17 }
  0x5e   : > { %s277_s28 = sadd.s32 %s1283_s16, %s1282_s26  ;;  %s281_s18 = sshll.u32 %s271_s15, 4  ;;  %s282_s18 = int_to_ptr.vmem [resolvable:$true] %s281_s18 }
  0x5f   : > { %s1284_s14 = sshll.u32 %s277_s28, 7  ;;  %s1516_s1 = scalar_lea.hbm %s2289_s2, 1024 }
  0x60   : > { %s279_s20 = scalar_lea.hbm %s2289_s2, %s1284_s14 }
  0x61   : > { %s1511_s5 = scalar_lea.hbm %s279_s20, 256  ;;  %p1517_p13 = scmp.lt.u32.totalorder %s279_s20, %s2289_s2 }
  0x62   : > { %p1512_p4 = scmp.ne.s32.totalorder %s279_s20, %s1511_s5  ;;  %p1518_p1 = scmp.lt.u32.totalorder %s1516_s1, %s1511_s5 }
  0x63   : > { %p1520_p0 = scmp.lt.u32.totalorder %s1511_s5, %s279_s20 }
  0x64   : > { %p1514_p6 = pnand %p1512_p4, %p1745_p12  ;;  %p1519_p2 = por %p1518_p1, %p1517_p13 }
  0x66   : > { %p1515_p11 = pneg %p1514_p6  ;;  %p1521_p3 = por %p1520_p0, %p1519_p2 }
  0x68   : > { %p1522_p7 = pnand %p1521_p3, %p1515_p11 }
  0x6a   : > { %1525 = shalt.err (!%p1522_p7)
}
  0x6b   : > { %s1526_s0 = scalar_lea.vmem %s282_s18, 256  ;;  %s1619_s13 = smov [#allocation6]  }
  0x6c   : > { %p1527_p5 = scmp.ne.s32.totalorder %s282_s18, %s1526_s0  ;;  %s1531_s30 = sshll.u32 %s1619_s13, 4  ;;  %s1532_s30 = int_to_ptr.vmem [resolvable:$false] %s1531_s30 }
  0x6d   : > { %s1533_s3 = scalar_lea.vmem %s1532_s30, 512  ;;  %p1534_p4 = scmp.lt.s32.totalorder %s282_s18, %s1532_s30 }
  0x6e   : > { %p1529_p8 = pnand %p1527_p5, %p1745_p12  ;;  %p1535_p6 = scmp.lt.s32.totalorder %s1533_s3, %s1526_s0 }
  0x70   : > { %p1530_p9 = pneg %p1529_p8  ;;  %p1536_p10 = por %p1535_p6, %p1534_p4 }
  0x72   : > { %p1537_p1 = pnand %p1536_p10, %p1530_p9 }
  0x74   : > { %1540 = shalt.err (!%p1537_p1)
}
  0x75   : > { %p2314_p13 = scmp.ne.s32.totalorder %s2308_s12, 0  ;;  %p2315_p11 = scmp.ne.s32.totalorder %s2312_s7, 0 }
  0x76   : > { %s315_s4 = sand.u32 (!%p2315_p11), 1, %s1587_s19   ;;  %p2316_p12 = scmp.ne.s32.totalorder (!%p2315_p11), %s2307_s6, 0 }
  0x77   : > { %1342 = dma.hbm_to_vmem [thread:$0]  (!%p2314_p13), %s279_s20, 256, %s282_s18, %s1739_s29  }
  0x78   : > { %313 = sbr.rel (%p2315_p11) target bundleno = 515 (0x203), region = 40  ;;  %s1286_s5 = sshll.u32 (!%p2315_p11), %s315_s4, 6 }
  0x79   : > { %s316_s11 = scalar_lea.sflag (!%p2315_p11), [#allocation3], %s315_s4  ;;  %s1830_s8 = scalar_lea.vmem (!%p2315_p11), [#allocation2], %s1286_s5 }
  0x7f   : > { %1574 = dma.done.wait (%p2316_p12), %s316_s11, 1024  }
  0x80   : > { %1576 = vsyncadd (%p2316_p12), %s316_s11, 4294966272  ;;  %s2317_s10 = sadd.s32 4294967295, %s1611_s25   ;;  %s1287_s20 = sshll.u32 %s315_s4, 5 }
  0x81   : > { %s324_s12 = sand.u32 1, %s2317_s10   ;;  %s1838_s7 = scalar_lea.vmem [#allocation4], %s1287_s20 }
  0x82   : > { %s325_s29 = scalar_lea.sflag [#allocation5], %s324_s12 }
  0x83   : > { %1578 = dma.done.wait (%p2316_p12), %s325_s29, 768  }
  0x84   : > { %1580 = vsyncadd (%p2316_p12), %s325_s29, 4294966528  ;;  %p396_p10 = scmp.lt.s32.totalorder %s1599_s22, 1  ;;  %s1288_s17 = sshll.u32 %s315_s4, 4  ;;  %v422_v2 = vld [vmem:[%s1830_s8 + $0x8] sm:$0xff]  ;;  %v1309_v3 = vld [vmem:[%s1838_s7] sm:$0xff]   ;;  %vm492_vm0 = vcmask 1043456  }
  0x85   : > { %p398_p2 = scmp.lt.s32.totalorder %s1595_s21, 1  ;;  %s337_s15 = scalar_lea.vmem [#allocation6], %s1288_s17  ;;  %v421_v4 = vld [vmem:[%s1830_s8] sm:$0xff]  ;;  %v423_v5 = vld [vmem:[%s1830_s8 + $0x10] sm:$0xff]  ;;  %v1311_v7 = vunpack.c.h.bf16 %v1309_v3  ;;  %v1310_v8 = vunpack.c.l.bf16 %v1309_v3  ;;  %v1324_v9 = vld [vmem:[%s1838_s7 + $0x8] sm:$0xff]   ;;  %vm1017_vm1 = vcmask 1041409  }
  0x86   : > { %s2338_s22 = smov (!%p396_p10, %s1599_s22), 1  ;;  %v453_v0 = vld [vmem:[%s337_s15] sm:$0xff]  ;;  %v454_v1 = vld [vmem:[%s337_s15 + $0x8] sm:$0xff]  ;;  %s2318_s1 = sld [smem:[#allocation15_spill]]  ;;  %v1314_v13 = vunpack.c.l.bf16 %v1324_v9  ;;  %v1315_v14 = vunpack.c.h.bf16 %v1324_v9  ;;  %vm1019_vm8 = vcmask 1042434   ;;  %vm1021_vm11 = vcmask 1043459  }
  0x87   : > { %s2340_s21 = smov (!%p398_p2, %s1595_s21), 1  ;;  %s1290_s26 = sshll.u32 %s2338_s22, 2  ;;  %v424_v10 = vld [vmem:[%s1830_s8 + $0x18] sm:$0xff]  ;;  %v425_v15 = vld [vmem:[%s1830_s8 + $0x20] sm:$0xff]  ;;  %v1325_v16 = vld [vmem:[%s1838_s7 + $0x10] sm:$0xff]   ;;  %v1865_v17 = vmul.f32 %v1311_v7, %v422_v2  ;;  %v1867_v18 = vmul.f32 %v1310_v8, %v421_v4 }
  0x88   : > { %s1289_s6 = sshll.u32 %s2340_s21, 1  ;;  %v1318_v19 = vunpack.c.l.bf16 %v1325_v16  ;;  %v1319_v20 = vunpack.c.h.bf16 %v1325_v16  ;;  %v1873_v23 = vmul.f32 %v1314_v13, %v423_v5  ;;  %v1875_v24 = vmul.f32 %v1315_v14, %v424_v10  ;;  %v426_v28 = vld [vmem:[%s1830_s8 + $0x28] sm:$0xff]  ;;  %v1326_v45 = vld [vmem:[%s1838_s7 + $0x18] sm:$0xff]   ;;  %v427_v52 = vld [vmem:[%s1830_s8 + $0x30] sm:$0xff]  ;;  %s1292_s9 = sshll.u32 %s2338_s22, 1 }
  0x89   : > { %s402_s16 = sadd.s32 %s1290_s26, %s1289_s6  ;;  %v461_v25 = vmul.f32 %v1865_v17, %v1865_v17  ;;  %v460_v26 = vmul.f32 %v1867_v18, %v1867_v18  ;;  %v1322_v55 = vunpack.c.l.bf16 %v1326_v45  ;;  %v428_v56 = vld [vmem:[%s1830_s8 + $0x38] sm:$0xff]  ;;  %v1323_v57 = vunpack.c.h.bf16 %v1326_v45  ;;  %s1996_s0 = sadd.s32 %s1292_s9, %s2340_s21 }
  0x8a   : > { %s1291_s28 = sshll.u32 %s402_s16, 2  ;;  %v1881_v27 = vmul.f32 %v1318_v19, %v425_v15  ;;  %v462_v31 = vmul.f32 %v1873_v23, %v1873_v23  ;;  %v463_v32 = vmul.f32 %v1875_v24, %v1875_v24  ;;  %v1894_v40 = vmul.f32 %v1319_v20, %v426_v28  ;;  %s1293_s13 = sshll.u32 %s1996_s0, 3 }
  0x8b   : > { %v477_v33 = vcombine.high %v461_v25, %v461_v25  ;;  %v498_v34 = vsel %vm492_vm0, %v461_v25, 0.0  ;;  %v476_v35 = vcombine.high %v460_v26, %v460_v26  ;;  %v493_v36 = vsel %vm492_vm0, %v460_v26, 0.0  ;;  %s2319_s4 = sld [smem:[#allocation16_spill]]  ;;  %s2320_s11 = sld [smem:[#allocation17_spill]] }
  0x8c   : > { %s404_s27 = scalar_lea.vmem %s2318_s1, %s1291_s28  ;;  %v478_v38 = vcombine.high %v462_v31, %v462_v31  ;;  %v479_v39 = vcombine.high %v463_v32, %v463_v32  ;;  %v503_v43 = vsel %vm492_vm0, %v462_v31, 0.0  ;;  %v464_v44 = vmul.f32 %v1881_v27, %v1881_v27 }
  0x8d   : > { %v455_v6 = vld [vmem:[%s404_s27] sm:$0xff]  ;;  %v499_v41 = vsel %vm492_vm0, %v477_v33, 0.0  ;;  %v494_v42 = vsel %vm492_vm0, %v476_v35, 0.0  ;;  %v508_v49 = vsel %vm492_vm0, %v463_v32, 0.0  ;;  %v465_v54 = vmul.f32 %v1894_v40, %v1894_v40 }
  0x8e   : > { %v456_v11 = vunpack.c.l.bf16 %v455_v6  ;;  %v457_v12 = vunpack.c.h.bf16 %v455_v6  ;;  %v500_v46 = vadd.f32 %v499_v41, %v498_v34  ;;  %v495_v47 = vadd.f32 %v494_v42, %v493_v36 }
  0x8f   : > { %v504_v48 = vsel %vm492_vm0, %v478_v38, 0.0  ;;  %v509_v50 = vsel %vm492_vm0, %v479_v39, 0.0  ;;  %v480_v51 = vcombine.high %v464_v44, %v464_v44  ;;  %v513_v58 = vsel %vm492_vm0, %v464_v44, 0.0 }
  0x90   : > { %v1869_v21 = vmul.f32 %v456_v11, %v453_v0  ;;  %v1871_v22 = vmul.f32 %v457_v12, %v454_v1  ;;  %501 = vadd.xlane.f32.xlu1 %v500_v46  ;;  %v505_v53 = vadd.f32 %v504_v48, %v503_v43  ;;  %v510_v60 = vadd.f32 %v509_v50, %v508_v49 }
  0x91   : > { %v514_v59 = vsel %vm492_vm0, %v480_v51, 0.0  ;;  %v481_v61 = vcombine.high %v465_v54, %v465_v54  ;;  %v1911_v62 = vmul.f32 %v1322_v55, %v427_v52  ;;  %v518_v63 = vsel %vm492_vm0, %v465_v54, 0.0  ;;  %s412_s5 = scalar_lea.vmem %s2319_s4, %s1293_s13  ;;  %s420_s8 = scalar_lea.vmem %s2320_s11, %s1293_s13 }
  0x92   : > { %v629_v29 = vmul.f32 %v1869_v21, %v1869_v21  ;;  %v630_v30 = vmul.f32 %v1871_v22, %v1871_v22  ;;  %v1914_v0 = vmul.f32 %v1323_v57, %v428_v56  ;;  %v515_v1 = vadd.f32 %v514_v59, %v513_v58 }
  0x93   : > { %v519_v2 = vsel %vm492_vm0, %v481_v61, 0.0  ;;  %v466_v3 = vmul.f32 %v1911_v62, %v1911_v62  ;;  %v1620_v14 = vmov 0   ;;  %v1621_v28 = vmov 839922192  }
  0x94   : > { %v631_v37 = vadd.f32 %v630_v30, %v629_v29  ;;  %506 = vadd.xlane.f32.xlu1 %v505_v53  ;;  %v467_v4 = vmul.f32 %v1914_v0, %v1914_v0  ;;  %v520_v5 = vadd.f32 %v519_v2, %v518_v63  ;;  %1416 = vset.pattern.permute.xlu0 %v1620_v14  ;;  %v558_v29 = vunpack.c.l.s4 %v1621_v28 }
  0x95   : > { %v482_v6 = vcombine.high %v466_v3, %v466_v3  ;;  %v523_v7 = vsel %vm492_vm0, %v466_v3, 0.0  ;;  %1415 = vset.pattern.permute.xlu1 %v1620_v14  ;;  %v560_v30 = vlaneseq  ;;  %v1622_v32 = vmov 1966171168  }
  0x96   : > { %632 = vadd.xlane.f32.xlu0 %v631_v37  ;;  %v483_v8 = vcombine.high %v467_v4, %v467_v4  ;;  %v528_v9 = vsel %vm492_vm0, %v467_v4, 0.0  ;;  %v643_v33 = vunpack.c.l.s4 %v1622_v32  ;;  %v559_v36 = vunpack.c.0.s8 %v558_v29 }
  0x97   : > { %v524_v10 = vsel %vm492_vm0, %v482_v6, 0.0  ;;  %v1926_v37 = vshrl.u32 %v560_v30, 7 }
  0x98   : > { %516 = vadd.xlane.f32.xlu1 %v515_v1  ;;  %v525_v11 = vadd.f32 %v524_v10, %v523_v7  ;;  %v529_v12 = vsel %vm492_vm0, %v483_v8, 0.0  ;;  %v644_v39 = vunpack.c.0.s8 %v643_v33 }
  0x99   : > { %v530_v13 = vadd.f32 %v529_v12, %v528_v9  ;;  %v1929_v46 = vsub.s32 %v559_v36, %v1926_v37  ;;  %v1935_v58 = vsub.s32 0, %v1926_v37 }
  0x9a   : > { %496 = vadd.xlane.f32.xlu0 %v495_v47  ;;  %v647_v50 = vsub.s32 %v644_v39, %v1926_v37 }
  0x9c   : > { %526 = vadd.xlane.f32.xlu1 %v525_v11 }
  0x9e   : > { %511 = vadd.xlane.f32.xlu0 %v510_v60  ;;  %v1940_v60 = vsub.s32 1, %v1926_v37 }
  0xa2   : > { %521 = vadd.xlane.f32.xlu0 %v520_v5 }
  0xa6   : > { %531 = vadd.xlane.f32.xlu0 %v530_v13 }
 0x11d   : > { %v502_v19 = vpop.xlane.xlu1 %501 }
 0x11e   : > { %v534_v20 = vmax.f32 %v502_v19, 1e-24 }
 0x121   : > { %v507_v31 = vpop.xlane.xlu1 %506 }
 0x122   : > { %v535_v34 = vmax.f32 %v507_v31, 1e-24 }
 0x123   : > { %v633_v15 = vpop.xlane.xlu0 %632 }
 0x124   : > { %v634_v16 = vmax.f32 %v633_v15, 1e-24 }
 0x125   : > { %v517_v38 = vpop.xlane.xlu1 %516 }
 0x126   : > { %1417 = vrsqrt.f32 %v634_v16  ;;  %v537_v41 = vmax.f32 %v517_v38, 1e-24 }
 0x127   : > { %v497_v25 = vpop.xlane.xlu0 %496  ;;  %1419 = vrsqrt.f32 %v534_v20 }
 0x128   : > { %v533_v26 = vmax.f32 %v497_v25, 1e-24 }
 0x129   : > { %v527_v49 = vpop.xlane.xlu1 %526 }
 0x12a   : > { %1421 = vrsqrt.f32 %v533_v26  ;;  %v539_v54 = vmax.f32 %v527_v49, 1e-24 }
 0x12b   : > { %v512_v35 = vpop.xlane.xlu0 %511  ;;  %1423 = vrsqrt.f32 %v535_v34 }
 0x12c   : > { %v536_v42 = vmax.f32 %v512_v35, 1e-24  ;;  %1425 = vrsqrt.f32 %v537_v41 }
 0x12f   : > { %v522_v43 = vpop.xlane.xlu0 %521 }
 0x130   : > { %v1418_v44 = vpop.eup %1417  ;;  %v538_v45 = vmax.f32 %v522_v43, 1e-24 }
 0x131   : > { %v636_v47 = vmul.f32 %v1418_v44, %v1869_v21  ;;  %v637_v48 = vmul.f32 %v1418_v44, %v1871_v22  ;;  %v1420_v51 = vpop.eup %1419 }
 0x132   : > { %1427 = vrsqrt.f32 %v538_v45  ;;  %v570_v59 = vrot.slane %v1420_v51, %v1929_v46 }
 0x133   : > { %v640_v52 = vcombine.low %v636_v47, %v637_v48  ;;  %v641_v53 = vcombine.high %v636_v47, %v637_v48  ;;  %1429 = vrsqrt.f32 %v536_v42  ;;  %v532_v55 = vpop.xlane.xlu0 %531 }
 0x134   : > { %v1422_v56 = vpop.eup %1421  ;;  %v540_v57 = vmax.f32 %v532_v55, 1e-24  ;;  %1431 = vrsqrt.f32 %v539_v54  ;;  %v622_v5 = vmul.f32 %v570_v59, %v1865_v17 }
 0x135   : > { %v563_v21 = vrot.slane %v1422_v56, %v1929_v46  ;;  %v648_v22 = vrot.slane %v640_v52, %v647_v50  ;;  %v655_v61 = vrot.slane %v641_v53, %v647_v50  ;;  %v1424_v63 = vpop.eup %1423 }
 0x136   : > { %1433 = vrsqrt.f32 %v540_v57  ;;  %v1426_v11 = vpop.eup %1425  ;;  %v577_v14 = vrot.slane %v1424_v63, %v1929_v46 }
 0x137   : > { %v664_v1 = vrot.slane %v648_v22, %v647_v50  ;;  %v656_v2 = vcombine.high %v648_v22, %v648_v22  ;;  %v1942_v3 = vrot.slane %v655_v61, %v647_v50  ;;  %v621_v4 = vmul.f32 %v563_v21, %v1867_v18 }
 0x138   : > { %v657_v6 = vcombine.high %v655_v61, %v655_v61  ;;  %v591_v19 = vrot.slane %v1426_v11, %v1929_v46  ;;  %v623_v36 = vmul.f32 %v577_v14, %v1873_v23 }
 0x139   : > { %v693_v7 = vrot.slane %v664_v1, %v1935_v58  ;;  %v697_v8 = vrot.slane %v664_v1, %v1940_v60  ;;  %v678_v9 = vrot.slane %v656_v2, %v647_v50  ;;  %v725_v10 = vrot.slane %v1942_v3, %v1935_v58 }
 0x13a   : > { %v729_v12 = vrot.slane %v1942_v3, %v1940_v60  ;;  %v685_v13 = vrot.slane %v657_v6, %v647_v50  ;;  %v686_v15 = vcombine.high %v664_v1, %v664_v1  ;;  %v625_v34 = vmul.f32 %v591_v19, %v1881_v27 }
 0x13b   : > { %v754_v18 = vcombine.low %v693_v7, %v697_v8  ;;  %v701_v17 = vrot.slane %v678_v9, %v1935_v58  ;;  %v705_v16 = vrot.slane %v678_v9, %v1940_v60  ;;  %v688_v39 = vcombine.high %v678_v9, %v678_v9 }
 0x13c   : > { %v1428_v20 = vpop.eup %1427  ;;  %v758_v25 = vcombine.low %v725_v10, %v729_v12  ;;  %v733_v26 = vrot.slane %v685_v13, %v1935_v58  ;;  %v737_v28 = vrot.slane %v685_v13, %v1940_v60  ;;  %v709_v29 = vrot.slane %v686_v15, %v1935_v58 }
 0x13d   : > { %v1430_v31 = vpop.eup %1429  ;;  %v770_v32 = vmul.f32 %v754_v18, %v621_v4  ;;  %v755_v33 = vcombine.low %v701_v17, %v705_v16  ;;  %v598_v35 = vrot.slane %v1428_v20, %v1929_v46  ;;  %v713_v38 = vrot.slane %v686_v15, %v1940_v60 }
 0x13e   : > { %v774_v43 = vmul.f32 %v758_v25, %v625_v34  ;;  %v759_v44 = vcombine.low %v733_v26, %v737_v28  ;;  %v584_v49 = vrot.slane %v1430_v31, %v1929_v46  ;;  %v1432_v50 = vpop.eup %1431  ;;  %v717_v23 = vrot.slane %v688_v39, %v1935_v58 }
 0x13f   : > { %v786_v41 = vcombine.high %v770_v32, %v770_v32  ;;  %v771_v42 = vmul.f32 %v755_v33, %v622_v5  ;;  %v802_v45 = vsel %vm492_vm0, %v770_v32, 0.0  ;;  %v626_v47 = vmul.f32 %v598_v35, %v1894_v40 }
 0x140   : > { %v756_v48 = vcombine.low %v709_v29, %v713_v38  ;;  %v790_v52 = vcombine.high %v774_v43, %v774_v43  ;;  %v1434_v53 = vpop.eup %1433  ;;  %v721_v21 = vrot.slane %v688_v39, %v1940_v60  ;;  %v822_v61 = vsel %vm492_vm0, %v774_v43, 0.0  ;;  %v972_v39 = vld [vmem:[%s412_s5] sm:$0xff] }
 0x141   : > { %v803_v27 = vsel %vm492_vm0, %v786_v41, 0.0  ;;  %v787_v51 = vcombine.high %v771_v42, %v771_v42  ;;  %v775_v55 = vmul.f32 %v759_v44, %v626_v47  ;;  %v807_v57 = vsel %vm492_vm0, %v771_v42, 0.0 }
 0x142   : > { %v804_v54 = vadd.f32 %v803_v27, %v802_v45  ;;  %v772_v56 = vmul.f32 %v756_v48, %v623_v36  ;;  %v823_v40 = vsel %vm492_vm0, %v790_v52, 0.0  ;;  %v605_v1 = vrot.slane %v1432_v50, %v1929_v46 }
 0x143   : > { %v808_v59 = vsel %vm492_vm0, %v787_v51, 0.0  ;;  %v791_v63 = vcombine.high %v775_v55, %v775_v55  ;;  %v824_v2 = vadd.f32 %v823_v40, %v822_v61  ;;  %v624_v5 = vmul.f32 %v584_v49, %v1875_v24 }
 0x144   : > { %805 = vadd.xlane.f32.xlu1 %v804_v54  ;;  %v809_v22 = vadd.f32 %v808_v59, %v807_v57  ;;  %v788_v4 = vcombine.high %v772_v56, %v772_v56  ;;  %v757_v6 = vcombine.low %v717_v23, %v721_v21  ;;  %v687_v8 = vcombine.high %v1942_v3, %v1942_v3 }
 0x145   : > { %v828_v7 = vsel %vm492_vm0, %v791_v63, 0.0  ;;  %v612_v9 = vrot.slane %v1434_v53, %v1929_v46  ;;  %v689_v10 = vcombine.high %v685_v13, %v685_v13  ;;  %v827_v11 = vsel %vm492_vm0, %v775_v55, 0.0 }
 0x146   : > { %810 = vadd.xlane.f32.xlu0 %v809_v22  ;;  %v812_v12 = vsel %vm492_vm0, %v772_v56, 0.0  ;;  %v813_v14 = vsel %vm492_vm0, %v788_v4, 0.0  ;;  %v773_v15 = vmul.f32 %v757_v6, %v624_v5  ;;  %v829_v18 = vadd.f32 %v828_v7, %v827_v11 }
 0x147   : > { %v627_v24 = vmul.f32 %v605_v1, %v1911_v62  ;;  %v741_v17 = vrot.slane %v687_v8, %v1935_v58  ;;  %v745_v16 = vrot.slane %v687_v8, %v1940_v60  ;;  %v628_v3 = vmul.f32 %v612_v9, %v1914_v0 }
 0x148   : > { %825 = vadd.xlane.f32.xlu1 %v824_v2  ;;  %v789_v19 = vcombine.high %v773_v15, %v773_v15  ;;  %v749_v46 = vrot.slane %v689_v10, %v1935_v58  ;;  %v753_v13 = vrot.slane %v689_v10, %v1940_v60  ;;  %v814_v20 = vadd.f32 %v813_v14, %v812_v12 }
 0x149   : > { %v760_v25 = vcombine.low %v741_v17, %v745_v16  ;;  %v817_v26 = vsel %vm492_vm0, %v773_v15, 0.0  ;;  %v2019_v27 = vand.u32 127, %v560_v30 }
 0x14a   : > { %830 = vadd.xlane.f32.xlu0 %v829_v18  ;;  %v818_v28 = vsel %vm492_vm0, %v789_v19, 0.0  ;;  %v761_v29 = vcombine.low %v749_v46, %v753_v13 }
 0x14b   : > { %v819_v62 = vadd.f32 %v818_v28, %v817_v26  ;;  %v776_v31 = vmul.f32 %v760_v25, %v627_v24  ;;  %v2034_v56 = vsub.s32 %v2019_v27, %v1926_v37 }
 0x14c   : > { %815 = vadd.xlane.f32.xlu1 %v814_v20  ;;  %v777_v32 = vmul.f32 %v761_v29, %v628_v3 }
 0x14d   : > { %v792_v0 = vcombine.high %v776_v31, %v776_v31  ;;  %v832_v58 = vsel %vm492_vm0, %v776_v31, 0.0 }
 0x14e   : > { %820 = vadd.xlane.f32.xlu0 %v819_v62  ;;  %v793_v33 = vcombine.high %v777_v32, %v777_v32  ;;  %v837_v35 = vsel %vm492_vm0, %v777_v32, 0.0 }
 0x14f   : > { %v833_v60 = vsel %vm492_vm0, %v792_v0, 0.0 }
 0x150   : > { %v834_v34 = vadd.f32 %v833_v60, %v832_v58  ;;  %v838_v36 = vsel %vm492_vm0, %v793_v33, 0.0  ;;  %vm1023_vm0 = vcmask 1044484  }
 0x151   : > { %v839_v38 = vadd.f32 %v838_v36, %v837_v35 }
 0x152   : > { %835 = vadd.xlane.f32.xlu1 %v834_v34 }
 0x153   : > { %840 = vadd.xlane.f32.xlu0 %v839_v38 }
 0x163   : > { %974 = vperm.xlu1 %1415, %v972_v39  }
 0x1d1   : > { %v2004_v41 = vpop.xlane.xlu1 %805 }
 0x1d2   : > { %v842_v42 = vmul.f32 %v2004_v41, %v2004_v41  ;;  %v2046_v61 = vmul.f32 0.87758255, %v2004_v41  ;;  %v2049_v37 = vadd.f32 -0.23971277, %v2004_v41  ;;  %v1043_v63 = vrot.slane %v2004_v41, %v2034_v56 }
 0x1d3   : > { %v2008_v43 = vpop.xlane.xlu0 %810  ;;  %vm946_vm10 = vcmp.gt.f32.partialorder %v2004_v41, -0.87758255 }
 0x1d4   : > { %v850_v44 = vsub.f32 1.0, %v842_v42  ;;  %v843_v45 = vmul.f32 %v2008_v43, %v2008_v43  ;;  %v1047_v22 = vrot.slane %v2008_v43, %v2034_v56  ;;  %v2055_v1 = vmul.f32 0.87758255, %v2008_v43 }
 0x1d5   : > { %v2012_v47 = vpop.xlane.xlu1 %825  ;;  %v2062_v6 = vadd.f32 -0.23971277, %v2008_v43  ;;  %vm947_vm9 = vcmp.gt.f32.partialorder %v2008_v43, -0.87758255 }
 0x1d6   : > { %v2014_v48 = vmax.f32 %v850_v44, 0.0  ;;  %v851_v49 = vsub.f32 1.0, %v843_v45  ;;  %v846_v50 = vmul.f32 %v2012_v47, %v2012_v47  ;;  %v2065_v7 = vmul.f32 0.87758255, %v2012_v47 }
 0x1d7   : > { %v2021_v51 = vpop.xlane.xlu0 %830  ;;  %v2068_v8 = vadd.f32 -0.23971277, %v2012_v47  ;;  %v1059_v10 = vrot.slane %v2012_v47, %v2034_v56  ;;  %v2080_v12 = vsel %vm1017_vm1, %v1047_v22, %v1043_v63 }
 0x1d8   : > { %1435 = vrsqrt.f32 %v2014_v48  ;;  %v2024_v52 = vmax.f32 %v851_v49, 0.0  ;;  %v854_v23 = vsub.f32 1.0, %v846_v50  ;;  %v847_v53 = vmul.f32 %v2021_v51, %v2021_v51 }
 0x1d9   : > { %v2028_v54 = vpop.xlane.xlu1 %815  ;;  %vm868_vm2 = vcmp.eq.f32.partialorder %v2014_v48, inf  ;;  %vm870_vm3 = vcmp.eq.f32.partialorder %v2014_v48, 0.0  ;;  %v871_v15 = vand.u32 2147483648, %v2014_v48  ;;  %v2084_v18 = vmul.f32 0.87758255, %v2021_v51 }
 0x1da   : > { %v844_v55 = vmul.f32 %v2028_v54, %v2028_v54  ;;  %1437 = vrsqrt.f32 %v2024_v52  ;;  %v2039_v57 = vmax.f32 %v854_v23, 0.0  ;;  %v855_v59 = vsub.f32 1.0, %v847_v53 }
 0x1db   : > { %v2037_v30 = vpop.xlane.xlu0 %820  ;;  %v2087_v24 = vadd.f32 -0.23971277, %v2021_v51  ;;  %v2092_v16 = vmul.f32 0.87758255, %v2028_v54  ;;  %vm875_vm4 = vcmp.eq.f32.partialorder %v2024_v52, inf  ;;  %vm877_vm5 = vcmp.eq.f32.partialorder %v2024_v52, 0.0 }
 0x1dc   : > { %v852_v40 = vsub.f32 1.0, %v844_v55  ;;  %v845_v21 = vmul.f32 %v2037_v30, %v2037_v30  ;;  %1439 = vrsqrt.f32 %v2039_v57  ;;  %v2057_v2 = vmax.f32 %v855_v59, 0.0 }
 0x1dd   : > { %v878_v46 = vand.u32 2147483648, %v2024_v52  ;;  %v2107_v26 = vadd.f32 -0.23971277, %v2028_v54  ;;  %v2111_v28 = vmul.f32 0.87758255, %v2037_v30  ;;  %vm896_vm6 = vcmp.eq.f32.partialorder %v2039_v57, inf }
 0x1de   : > { %v2059_v4 = vmax.f32 %v852_v40, 0.0  ;;  %v853_v5 = vsub.f32 1.0, %v845_v21  ;;  %1441 = vrsqrt.f32 %v2057_v2  ;;  %vm898_vm7 = vcmp.eq.f32.partialorder %v2039_v57, 0.0 }
 0x1df   : > { %v2070_v9 = vpop.xlane.xlu1 %835  ;;  %v899_v32 = vand.u32 2147483648, %v2039_v57  ;;  %v2121_v0 = vadd.f32 -0.23971277, %v2037_v30  ;;  %v1051_v35 = vrot.slane %v2028_v54, %v2034_v56  ;;  %v1055_v36 = vrot.slane %v2037_v30, %v2034_v56 }
 0x1e0   : > { %v2077_v11 = vpop.xlane.xlu0 %840  ;;  %1443 = vrsqrt.f32 %v2059_v4  ;;  %v2094_v19 = vmax.f32 %v853_v5, 0.0  ;;  %v848_v3 = vmul.f32 %v2070_v9, %v2070_v9  ;;  %v1063_v44 = vrot.slane %v2021_v51, %v2034_v56 }
 0x1e1   : > { %v849_v13 = vmul.f32 %v2077_v11, %v2077_v11  ;;  %vm903_vm12 = vcmp.eq.f32.partialorder %v2057_v2, inf  ;;  %vm905_vm13 = vcmp.eq.f32.partialorder %v2057_v2, 0.0  ;;  %vm882_vm14 = vcmp.eq.f32.partialorder %v2059_v4, inf }
 0x1e2   : > { %v1436_v14 = vpop.eup %1435  ;;  %1445 = vrsqrt.f32 %v2094_v19  ;;  %v856_v62 = vsub.f32 1.0, %v848_v3  ;;  %vm948_vm15 = vcmp.gt.f32.partialorder %v2028_v54, -0.87758255  ;;  %v885_v21 = vand.u32 2147483648, %v2059_v4 }
 0x1e3   : > { %v867_v17 = vmul.f32 %v1436_v14, %v2014_v48  ;;  %v857_v33 = vsub.f32 1.0, %v849_v13  ;;  %v2159_v22 = vmul.f32 0.87758255, %v2070_v9 }
 0x1e4   : > { %v1438_v20 = vpop.eup %1437  ;;  %v2126_v34 = vmax.f32 %v856_v62, 0.0 }
 0x1e5   : > { %v869_v25 = vsel %vm868_vm2, %v2014_v48, %v867_v17  ;;  %v874_v29 = vmul.f32 %v1438_v20, %v2024_v52  ;;  %v2136_v42 = vmax.f32 %v857_v33, 0.0  ;;  %vm950_vm2 = vcmp.gt.f32.partialorder %v2012_v47, -0.87758255 }
 0x1e6   : > { %v872_v31 = vsel %vm870_vm3, %v871_v15, %v869_v25  ;;  %v1440_v58 = vpop.eup %1439  ;;  %1447 = vrsqrt.f32 %v2126_v34  ;;  %vm884_vm3 = vcmp.eq.f32.partialorder %v2059_v4, 0.0  ;;  %v892_v17 = vand.u32 2147483648, %v2094_v19 }
 0x1e7   : > { %v876_v60 = vsel %vm875_vm4, %v2024_v52, %v874_v29  ;;  %v895_v39 = vmul.f32 %v1440_v58, %v2039_v57  ;;  %v930_v45 = vmul.f32 0.47942555, %v872_v31  ;;  %v906_v52 = vand.u32 2147483648, %v2057_v2 }
 0x1e8   : > { %v879_v38 = vsel %vm877_vm5, %v878_v46, %v876_v60  ;;  %v1442_v49 = vpop.eup %1441  ;;  %1449 = vrsqrt.f32 %v2136_v42  ;;  %vm951_vm4 = vcmp.gt.f32.partialorder %v2021_v51, -0.87758255  ;;  %vm889_vm5 = vcmp.eq.f32.partialorder %v2094_v19, inf }
 0x1e9   : > { %v931_v48 = vmul.f32 0.47942555, %v879_v38  ;;  %v897_v50 = vsel %vm896_vm6, %v2039_v57, %v895_v39  ;;  %v902_v59 = vmul.f32 %v1442_v49, %v2057_v2  ;;  %v938_v57 = vsub.f32 %v2046_v61, %v930_v45 }
 0x1ea   : > { %v1444_v23 = vpop.eup %1443  ;;  %v900_v55 = vsel %vm898_vm7, %v899_v32, %v897_v50  ;;  %vm891_vm6 = vcmp.eq.f32.partialorder %v2094_v19, 0.0  ;;  %vm949_vm7 = vcmp.gt.f32.partialorder %v2037_v30, -0.87758255  ;;  %v1073_v20 = vsel %vm1019_vm8, %v1051_v35, %v2080_v12 }
 0x1eb   : > { %v939_v53 = vsub.f32 %v2055_v1, %v931_v48  ;;  %v881_v40 = vmul.f32 %v1444_v23, %v2059_v4  ;;  %v934_v63 = vmul.f32 0.47942555, %v900_v55  ;;  %v904_v1 = vsel %vm903_vm12, %v2057_v2, %v902_v59 }
 0x1ec   : > { %v1446_v5 = vpop.eup %1445  ;;  %v907_v14 = vsel %vm905_vm13, %v906_v52, %v904_v1  ;;  %vm1025_vm12 = vcmask 1045509   ;;  %vm910_vm13 = vcmp.eq.f32.partialorder %v2126_v34, inf  ;;  %v962_v43 = vsel %vm946_vm10, %v938_v57, %v2049_v37 }
 0x1ed   : > { %v883_v15 = vsel %vm882_vm14, %v2059_v4, %v881_v40  ;;  %v963_v61 = vsel %vm947_vm9, %v939_v53, %v2062_v6  ;;  %v935_v3 = vmul.f32 0.47942555, %v907_v14  ;;  %v888_v13 = vmul.f32 %v1446_v5, %v2094_v19  ;;  %v975_v40 = vpop.permute.xlu1 %974 }
 0x1ee   : > { %v886_v46 = vsel %vm884_vm3, %v885_v21, %v883_v15  ;;  %vm912_vm14 = vcmp.eq.f32.partialorder %v2126_v34, 0.0  ;;  %v942_v6 = vsub.f32 %v2065_v7, %v934_v63  ;;  %v913_v25 = vand.u32 2147483648, %v2126_v34 }
 0x1ef   : > { %v932_v2 = vmul.f32 0.47942555, %v886_v46  ;;  %v890_v4 = vsel %vm889_vm5, %v2094_v19, %v888_v13  ;;  %v943_v29 = vsub.f32 %v2084_v18, %v935_v3  ;;  %vm1027_vm9 = vcmask 1046534  }
 0x1f0   : > { %v893_v31 = vsel %vm891_vm6, %v892_v17, %v890_v4  ;;  %v992_v12 = vrot.slane %v963_v61, %v2034_v56  ;;  %v1448_v41 = vpop.eup %1447  ;;  %vm917_vm10 = vcmp.eq.f32.partialorder %v2136_v42, inf  ;;  %vm919_vm3 = vcmp.eq.f32.partialorder %v2136_v42, 0.0 }
 0x1f1   : > { %v940_v62 = vsub.f32 %v2092_v16, %v932_v2  ;;  %v933_v37 = vmul.f32 0.47942555, %v893_v31  ;;  %v1074_v7 = vsel %vm1021_vm11, %v1055_v36, %v1073_v20  ;;  %v909_v16 = vmul.f32 %v1448_v41, %v2126_v34 }
 0x1f2   : > { %v1450_v32 = vpop.eup %1449  ;;  %v920_v19 = vand.u32 2147483648, %v2136_v42  ;;  %v988_v33 = vrot.slane %v962_v43, %v2034_v56  ;;  %v966_v58 = vsel %vm950_vm2, %v942_v6, %v2068_v8  ;;  %v967_v54 = vsel %vm951_vm4, %v943_v29, %v2087_v24 }
 0x1f3   : > { %v964_v18 = vsel %vm948_vm15, %v940_v62, %v2107_v26  ;;  %v941_v60 = vsub.f32 %v2111_v28, %v933_v37  ;;  %v916_v35 = vmul.f32 %v1450_v32, %v2136_v42  ;;  %v911_v26 = vsel %vm910_vm13, %v2126_v34, %v909_v16 }
 0x1f4   : > { %v996_v36 = vrot.slane %v964_v18, %v2034_v56  ;;  %v1018_v38 = vsel %vm1017_vm1, %v992_v12, %v988_v33  ;;  %v1075_v8 = vsel %vm1023_vm0, %v1059_v10, %v1074_v7  ;;  %v914_v39 = vsel %vm912_vm14, %v913_v25, %v911_v26 }
 0x1f5   : > { %v965_v28 = vsel %vm949_vm7, %v941_v60, %v2121_v0  ;;  %v918_v24 = vsel %vm917_vm10, %v2136_v42, %v916_v35  ;;  %v936_v48 = vmul.f32 0.47942555, %v914_v39  ;;  %v1302_v49 = vadd.f32 -0.23971277, %v2070_v9 }
 0x1f6   : > { %v1020_v45 = vsel %vm1019_vm8, %v996_v36, %v1018_v38  ;;  %v921_v47 = vsel %vm919_vm3, %v920_v19, %v918_v24  ;;  %v1000_v10 = vrot.slane %v965_v28, %v2034_v56  ;;  %v929_v30 = vmul.f32 0.87758255, %v2077_v11 }
 0x1f7   : > { %v937_v0 = vmul.f32 0.47942555, %v921_v47  ;;  %v1004_v34 = vrot.slane %v966_v58, %v2034_v56  ;;  %v1067_v50 = vrot.slane %v2070_v9, %v2034_v56  ;;  %v944_v52 = vsub.f32 %v2159_v22, %v936_v48 }
 0x1f8   : > { %v1008_v23 = vrot.slane %v967_v54, %v2034_v56  ;;  %v1022_v53 = vsel %vm1021_vm11, %v1000_v10, %v1020_v45  ;;  %v1076_v42 = vsel %vm1025_vm12, %v1063_v44, %v1075_v8  ;;  %vm952_vm1 = vcmp.gt.f32.partialorder %v2070_v9, -0.87758255 }
 0x1f9   : > { %v945_v55 = vsub.f32 %v929_v30, %v937_v0  ;;  %v1303_v59 = vadd.f32 -0.23971277, %v2077_v11  ;;  %v1024_v21 = vsel %vm1023_vm0, %v1004_v34, %v1022_v53  ;;  %v968_v57 = vsel %vm952_vm1, %v944_v52, %v1302_v49 }
 0x1fa   : > { %vm953_vm8 = vcmp.gt.f32.partialorder %v2077_v11, -0.87758255  ;;  %v1026_v22 = vsel %vm1025_vm12, %v1008_v23, %v1024_v21  ;;  %v1071_v63 = vrot.slane %v2077_v11, %v2034_v56  ;;  %v1012_v44 = vrot.slane %v968_v57, %v2034_v56 }
 0x1fb   : > { %v969_v51 = vsel %vm953_vm8, %v945_v55, %v1303_v59  ;;  %vm1029_vm11 = vcmask 1047559   ;;  %v1077_v9 = vsel %vm1027_vm9, %v1067_v50, %v1076_v42  ;;  %vm976_vm15 = vcmp.eq.s32.totalorder %v2019_v27, %v975_v40 }
 0x1fc   : > { %v1016_v1 = vrot.slane %v969_v51, %v2034_v56  ;;  %v1028_v5 = vsel %vm1027_vm9, %v1012_v44, %v1026_v22  ;;  %v1078_v15 = vsel %vm1029_vm11, %v1071_v63, %v1077_v9  ;;  %vm1082_vm0 = vcmask 31744  }
 0x1fe   : > { %v1030_v14 = vsel %vm1029_vm11, %v1016_v1, %v1028_v5 }
 0x1ff   : > { %v1080_v11 = vsel %vm976_vm15, %v1030_v14, %v1078_v15 }
 0x200   : > { %v1081_v17 = vmul.f32 30.0, %v1080_v11 }
 0x202   : > { %1083 = vst.msk [vmem:[%s420_s8] sm:$0xff] %vm1082_vm0, %v1081_v17 }
 0x203 PF: > { %s21_s25 = sadd.s32 1, %s1611_s25   ;;  %s2321_s10 = sld [smem:[#allocation9_spill]] }
 0x204   : > { %p18_p0 = scmp.ge.s32.totalorder %s21_s25, 6   ;;  %s2322_s20 = sld [smem:[#allocation12_spill]] }
 0x205   : > { %s2323_s12 = sld [smem:[#allocation10_spill]]  ;;  %s2324_s29 = sld [smem:[#allocation11_spill]] }
 0x206   : > { %s2325_s18 = smov %s1587_s19  ;;  %s2327_s21 = smov %s1603_s23 }
 0x207   : > { %s2328_s22 = smov %s1607_s24  ;;  %20 = sbr.rel (!%p18_p0) target bundleno = 13 (0xd), region = 110 }
 0x209   : > { %s2326_s19 = smov %s2321_s10 }
 0x20b   : > { %s2329_s23 = smov %s2323_s12  ;;  %s2330_s24 = smov %s2324_s29 }
 0x20e   :  { %1111 = vsyncpa [#allocation3], 1 }
 0x20f   :  { %1113 = vsyncpa [#allocation3 + $0x1], 1 }
 0x210   :  { %1114 = vsyncpa [#allocation5], 1 }
 0x211   :  { %1116 = vsyncpa [#allocation5 + $0x1], 1 }

</bundles_post_ra>
